<compile_context>
chip_gen: v7x
topology: tpu7x:2x2x1
jax: 0.10.0
libtpu: 0.0.40
codegen_flags: <defaults>
</compile_context>

<pallas_src>
import functools

import jax
import jax.numpy as jnp
from jax import lax
from jax.experimental import pallas as pl
from jax.experimental.pallas import tpu as pltpu


def _round_up(x, m):
    return ((x + m - 1) // m) * m


def _spatial_gather_kernel(probs_ref, feats_ref, out_ref,
                           m_sc, l_sc, acc_sc, *, scale):
    """One (batch, c_tile, hw_tile) grid step.

    probs_ref: (K, tile_hw)      class logits tile
    feats_ref: (tile_c, tile_hw) feature tile (native channel-major layout)
    out_ref:   (K, tile_c)       context output (written on last hw tile)
    m_sc/l_sc: (K, 1)            running max / running denom (f32)
    acc_sc:    (K, tile_c)       running weighted-feature accumulator (f32)
    """
    hw_i = pl.program_id(2)

    @pl.when(hw_i == 0)
    def _():
        m_sc[...] = jnp.full_like(m_sc, -jnp.inf)
        l_sc[...] = jnp.zeros_like(l_sc)
        acc_sc[...] = jnp.zeros_like(acc_sc)

    p = probs_ref[...].astype(jnp.float32)                     # (K, thw)
    if scale != 1.0:                                            # static check
        p = p * scale
    f = feats_ref[...]                                          # (tc, thw)

    m_prev = m_sc[...]                                          # (K, 1)
    m_new = jnp.maximum(m_prev, p.max(axis=-1, keepdims=True))  # (K, 1)
    alpha = jnp.exp(m_prev - m_new)                             # (K, 1)
    e = jnp.exp(p - m_new)                                      # (K, thw)

    l_sc[...] = alpha * l_sc[...] + e.sum(axis=-1, keepdims=True)
    # Contract over HW with a transposed RHS ("NT" dot): (K,thw).(tc,thw)^T
    acc_sc[...] = alpha * acc_sc[...] + lax.dot_general(
        e.astype(f.dtype), f,
        dimension_numbers=(((1,), (1,)), ((), ())),
        preferred_element_type=jnp.float32)                     # (K, tc)
    m_sc[...] = m_new

    @pl.when(hw_i == pl.num_programs(2) - 1)
    def _():
        # Exact reciprocal (approx=True acceptable for bf16 outputs).
        inv_l = pl.reciprocal(l_sc[...], approx=False)          # (K, 1)
        out_ref[...] = (acc_sc[...] * inv_l).astype(out_ref.dtype)


def _pick_tiles(C, K, HW, feats_dtype, probs_dtype, tile_c=None, tile_hw=None):
    """VMEM-aware tile selection (per-generation: v5e/v6e 128 MiB, v7x 64 MiB)."""
    try:
        vmem_cap = int(pltpu.get_tpu_info().vmem_capacity_bytes)
    except Exception:
        vmem_cap = 64 * 1024 * 1024   # conservative (v7x-sized) fallback
    budget = int(vmem_cap * 0.6)      # headroom for compiler temporaries

    # Channel tile: multiple of 128 (out-block lane rule) or the full extent.
    if tile_c is None:
        if C > 256 and C % 256 == 0:
            tile_c = 256
        elif C > 128 and C % 128 == 0:
            tile_c = 128
        else:
            tile_c = C
    assert C % tile_c == 0 and (tile_c == C or tile_c % 128 == 0), \
        "tile_c must divide C and be a multiple of 128 (or equal C)"

    f_sz = jnp.dtype(feats_dtype).itemsize
    p_sz = jnp.dtype(probs_dtype).itemsize
    k_pad = max(_round_up(K, 8), 8)
    c_pad = max(_round_up(tile_c, 128), 128)

    def footprint(thw):
        feats_buf = 2 * tile_c * thw * f_sz          # double-buffered feats tile
        probs_buf = 2 * k_pad * thw * p_sz           # double-buffered probs tile
        out_buf = 2 * k_pad * c_pad * f_sz           # double-buffered output tile
        temps = 2 * k_pad * thw * 4                  # in-kernel f32 temporaries p, e
        scratch = k_pad * c_pad * 4 + 2 * k_pad * 128 * 4
        return feats_buf + probs_buf + out_buf + temps + scratch

    if tile_hw is None:
        cap = 8192
        # Prefer a lane-aligned tile that divides HW exactly (no padding copy).
        t = (min(cap, HW) // 128) * 128
        while t >= 128:
            if HW % t == 0 and footprint(t) <= budget:
                break
            t -= 128
        if t >= 128:
            tile_hw = t
        else:
            # No exact divisor: pad HW, use the largest power-of-two tile that fits.
            hw_lane = _round_up(HW, 128)
            t = 128
            while t * 2 <= min(cap, hw_lane) and footprint(t * 2) <= budget:
                t *= 2
            tile_hw = t

    hw_pad = _round_up(HW, tile_hw)
    vmem_limit = min(int(vmem_cap * 0.9),
                     max(2 * footprint(tile_hw), 32 * 1024 * 1024))
    return tile_c, tile_hw, hw_pad, vmem_limit


def spatial_gather(feats, probs, scale=1.0, *, tile_hw=None, tile_c=None):
    """feats: (B, C, H, W), probs: (B, K, H, W) -> (B, C, K, 1)."""
    B, C, H, W = feats.shape
    Bp, K, Hp, Wp = probs.shape
    assert (B, H, W) == (Bp, Hp, Wp), "feats/probs spatial mismatch"
    HW = H * W

    tile_c, tile_hw, hw_pad, vmem_limit = _pick_tiles(
        C, K, HW, feats.dtype, probs.dtype, tile_c=tile_c, tile_hw=tile_hw)
    n_c = C // tile_c
    n_hw = hw_pad // tile_hw

    probs_flat = probs.reshape(B, K, HW)          # (B, K, HW)
    feats_flat = feats.reshape(B, C, HW)          # (B, C, HW)  -- NO transpose
    if hw_pad != HW:
        pad = hw_pad - HW
        # Finite large negative => softmax weight exactly 0 on padded columns
        # (assumes scale >= 0, which holds for this module).
        probs_flat = jnp.pad(probs_flat, ((0, 0), (0, 0), (0, pad)),
                             constant_values=-1e30)
        feats_flat = jnp.pad(feats_flat, ((0, 0), (0, 0), (0, pad)))

    kernel = functools.partial(_spatial_gather_kernel, scale=float(scale))

    out = pl.pallas_call(
        kernel,
        out_shape=jax.ShapeDtypeStruct((B, K, C), feats.dtype),
        grid=(B, n_c, n_hw),
        in_specs=[
            # Batch dim squeezed out of the kernel view (None == pl.Squeezed).
            pl.BlockSpec((None, K, tile_hw), lambda b, c, h: (b, 0, h)),
            pl.BlockSpec((None, tile_c, tile_hw), lambda b, c, h: (b, c, h)),
        ],
        out_specs=pl.BlockSpec((None, K, tile_c), lambda b, c, h: (b, 0, c)),
        scratch_shapes=[
            pltpu.VMEM((K, 1), jnp.float32),        # running max
            pltpu.VMEM((K, 1), jnp.float32),        # running denom
            pltpu.VMEM((K, tile_c), jnp.float32),   # context accumulator
        ],
        compiler_params=pltpu.CompilerParams(
            dimension_semantics=("parallel", "parallel", "arbitrary"),
            vmem_limit_bytes=int(vmem_limit),
        ),
    )(probs_flat, feats_flat)

    # (B, K, C) -> (B, C, K, 1).  The context tensor is tiny, so this host
    # transpose is negligible; the kernel keeps lane-dense output stores.
    return out.transpose(0, 2, 1)[..., None]


def _reference(feats, probs, scale):
    """Pure-JAX mirror of the PyTorch module (f32)."""
    B, C, H, W = feats.shape
    K = probs.shape[1]
    probs_flat = probs.reshape(B, K, H * W).astype(jnp.float32)
    feats_flat = feats.reshape(B, C, H * W).astype(jnp.float32).transpose(0, 2, 1)
    attn = jax.nn.softmax(scale * probs_flat, axis=2)
    ctx = jnp.einsum("bkh,bhc->bkc", attn, feats_flat)
    return ctx.transpose(0, 2, 1)[..., None]


if __name__ == "__main__":
    base_key = jax.random.PRNGKey(0)

    def run_case(idx, B, C, K, H, W, scale, feats_dtype=jnp.float32,
                 tol=1e-4, **tile_kw):
        k1, k2 = jax.random.split(jax.random.fold_in(base_key, idx))
        feats = jax.random.normal(k1, (B, C, H, W), dtype=jnp.float32)
        feats = feats.astype(feats_dtype)
        probs = jax.random.normal(k2, (B, K, H, W), dtype=jnp.float32)

        y = jax.block_until_ready(spatial_gather(feats, probs, scale, **tile_kw))
        ref = _reference(feats, probs, scale)

        assert y.shape == (B, C, K, 1), f"bad shape {y.shape}"
        assert y.dtype == feats.dtype, f"bad dtype {y.dtype}"
        err = jnp.max(jnp.abs(y.astype(jnp.float32) - ref))
        assert jnp.allclose(y.astype(jnp.float32), ref, atol=tol, rtol=tol), \
            f"case {idx}: mismatch vs reference (max abs err {err})"

    # 1) Baseline small case (HW divisible by 128, single hw/c tile).
    run_case(0, B=2, C=32, K=4, H=16, W=16, scale=1.0)
    # 2) Unaligned spatial extent (exercises -1e30 padding) and scale != 1.
    run_case(1, B=1, C=48, K=7, H=15, W=15, scale=0.5)
    # 3) Forced multi-tile reduction over HW plus channel-tile split
    #    (exercises the online softmax rescale and the parallel C axis).
    run_case(2, B=1, C=256, K=5, H=16, W=16, scale=1.0, tile_hw=128, tile_c=128)
    # 4) bf16 features (halves feats HBM traffic), f32 accumulation.
    run_case(3, B=1, C=64, K=4, H=16, W=16, scale=2.0,
             feats_dtype=jnp.bfloat16, tol=3e-2)

    print("KERNEL_OK")
</pallas_src>

<mosaic_0001>
module attributes {stable_mosaic.version = 11 : i64} {
  func.func @_spatial_gather_kernel(%arg0: i32, %arg1: i32, %arg2: i32, %arg3: memref<1x4x256xf32, #tpu.memory_space<vmem>>, %arg4: memref<1x32x256xf32, #tpu.memory_space<vmem>>, %arg5: memref<1x4x32xf32, #tpu.memory_space<vmem>>, %arg6: memref<4x1xf32, #tpu.memory_space<vmem>>, %arg7: memref<4x1xf32, #tpu.memory_space<vmem>>, %arg8: memref<4x32xf32, #tpu.memory_space<vmem>>) attributes {dimension_semantics = [#tpu.dimension_semantics<parallel>, #tpu.dimension_semantics<parallel>, #tpu.dimension_semantics<arbitrary>], iteration_bounds = array<i64: 2, 1, 1>, scalar_prefetch = 0 : i64, scratch_operands = 3 : i64, tpu.core_type = #tpu.core_type<tc>, window_params = [{transform_indices = @transform_0, window_bounds = array<i64: 1, 4, 256>}, {transform_indices = @transform_1, window_bounds = array<i64: 1, 32, 256>}, {transform_indices = @transform_2, window_bounds = array<i64: 1, 4, 32>}]} {
    %c0_i32 = arith.constant 0 : i32
    %0 = arith.cmpi eq, %arg2, %c0_i32 : i32
    %1 = arith.extui %0 : i1 to i32
    %c0_i32_0 = arith.constant 0 : i32
    %2 = arith.cmpi ne, %1, %c0_i32_0 : i32
    scf.if %2 {
      %cst_22 = arith.constant 0xFF800000 : f32
      %32 = vector.broadcast %cst_22 : f32 to vector<4x1xf32>
      %c0_23 = arith.constant 0 : index
      %c0_24 = arith.constant 0 : index
      %33 = vector.load %arg6[%c0_23, %c0_24] : memref<4x1xf32, #tpu.memory_space<vmem>>, vector<4x1xf32>
      tpu.vector_store %arg6[%c0_23, %c0_24], %32 {strides = array<i32>} : memref<4x1xf32, #tpu.memory_space<vmem>>, vector<4x1xf32>,
      %cst_25 = arith.constant 0.000000e+00 : f32
      %34 = vector.broadcast %cst_25 : f32 to vector<4x1xf32>
      %c0_26 = arith.constant 0 : index
      %c0_27 = arith.constant 0 : index
      %35 = vector.load %arg7[%c0_26, %c0_27] : memref<4x1xf32, #tpu.memory_space<vmem>>, vector<4x1xf32>
      tpu.vector_store %arg7[%c0_26, %c0_27], %34 {strides = array<i32>} : memref<4x1xf32, #tpu.memory_space<vmem>>, vector<4x1xf32>,
      %cst_28 = arith.constant 0.000000e+00 : f32
      %36 = vector.broadcast %cst_28 : f32 to vector<4x32xf32>
      %c0_29 = arith.constant 0 : index
      %c0_30 = arith.constant 0 : index
      %37 = vector.load %arg8[%c0_29, %c0_30] : memref<4x32xf32, #tpu.memory_space<vmem>>, vector<4x32xf32>
      tpu.vector_store %arg8[%c0_29, %c0_30], %36 {strides = array<i32>} : memref<4x32xf32, #tpu.memory_space<vmem>>, vector<4x32xf32>,
    } else {
    }
    %c0 = arith.constant 0 : index
    %c0_1 = arith.constant 0 : index
    %c0_2 = arith.constant 0 : index
    %3 = vector.load %arg3[%c0, %c0_1, %c0_2] : memref<1x4x256xf32, #tpu.memory_space<vmem>>, vector<1x4x256xf32>
    %4 = vector.shape_cast %3 : vector<1x4x256xf32> to vector<4x256xf32>
    %c0_3 = arith.constant 0 : index
    %c0_4 = arith.constant 0 : index
    %c0_5 = arith.constant 0 : index
    %5 = vector.load %arg4[%c0_3, %c0_4, %c0_5] : memref<1x32x256xf32, #tpu.memory_space<vmem>>, vector<1x32x256xf32>
    %6 = vector.shape_cast %5 : vector<1x32x256xf32> to vector<32x256xf32>
    %c0_6 = arith.constant 0 : index
    %c0_7 = arith.constant 0 : index
    %7 = vector.load %arg6[%c0_6, %c0_7] : memref<4x1xf32, #tpu.memory_space<vmem>>, vector<4x1xf32>
    %cst = arith.constant dense<0xFF800000> : vector<4xf32>
    %8 = vector.multi_reduction <maximumf>, %4, %cst [1] : vector<4x256xf32> to vector<4xf32>
    %9 = vector.shape_cast %8 : vector<4xf32> to vector<4x1xf32>
    %10 = arith.maximumf %7, %9 : vector<4x1xf32>
    %11 = arith.subf %7, %10 : vector<4x1xf32>
    %12 = math.exp %11 : vector<4x1xf32>
    %13 = vector.broadcast %10 : vector<4x1xf32> to vector<4x256xf32>
    %14 = arith.subf %4, %13 : vector<4x256xf32>
    %15 = math.exp %14 : vector<4x256xf32>
    %c0_8 = arith.constant 0 : index
    %c0_9 = arith.constant 0 : index
    %16 = vector.load %arg7[%c0_8, %c0_9] : memref<4x1xf32, #tpu.memory_space<vmem>>, vector<4x1xf32>
    %17 = arith.mulf %12, %16 : vector<4x1xf32>
    %cst_10 = arith.constant dense<0.000000e+00> : vector<4xf32>
    %18 = vector.multi_reduction <add>, %15, %cst_10 [1] : vector<4x256xf32> to vector<4xf32>
    %19 = vector.shape_cast %18 : vector<4xf32> to vector<4x1xf32>
    %20 = arith.addf %17, %19 : vector<4x1xf32>
    %c0_11 = arith.constant 0 : index
    %c0_12 = arith.constant 0 : index
    %21 = vector.load %arg7[%c0_11, %c0_12] : memref<4x1xf32, #tpu.memory_space<vmem>>, vector<4x1xf32>
    tpu.vector_store %arg7[%c0_11, %c0_12], %20 {strides = array<i32>} : memref<4x1xf32, #tpu.memory_space<vmem>>, vector<4x1xf32>,
    %c0_13 = arith.constant 0 : index
    %c0_14 = arith.constant 0 : index
    %22 = vector.load %arg8[%c0_13, %c0_14] : memref<4x32xf32, #tpu.memory_space<vmem>>, vector<4x32xf32>
    %23 = vector.broadcast %12 : vector<4x1xf32> to vector<4x32xf32>
    %24 = arith.mulf %23, %22 : vector<4x32xf32>
    %cst_15 = arith.constant dense<0.000000e+00> : vector<4x32xf32>
    %25 = tpu.matmul %15, %6, %cst_15 {dimension_numbers = #tpu.dot_dimension_numbers<[1], [1], [0], [0], [0, 0, 1, 0], [], []>} : vector<4x256xf32>, vector<32x256xf32>, vector<4x32xf32> -> vector<4x32xf32>
    %26 = arith.addf %24, %25 : vector<4x32xf32>
    %c0_16 = arith.constant 0 : index
    %c0_17 = arith.constant 0 : index
    %27 = vector.load %arg8[%c0_16, %c0_17] : memref<4x32xf32, #tpu.memory_space<vmem>>, vector<4x32xf32>
    tpu.vector_store %arg8[%c0_16, %c0_17], %26 {strides = array<i32>} : memref<4x32xf32, #tpu.memory_space<vmem>>, vector<4x32xf32>,
    %c0_18 = arith.constant 0 : index
    %c0_19 = arith.constant 0 : index
    %28 = vector.load %arg6[%c0_18, %c0_19] : memref<4x1xf32, #tpu.memory_space<vmem>>, vector<4x1xf32>
    tpu.vector_store %arg6[%c0_18, %c0_19], %10 {strides = array<i32>} : memref<4x1xf32, #tpu.memory_space<vmem>>, vector<4x1xf32>,
    %c0_i32_20 = arith.constant 0 : i32
    %29 = arith.cmpi eq, %arg2, %c0_i32_20 : i32
    %30 = arith.extui %29 : i1 to i32
    %c0_i32_21 = arith.constant 0 : i32
    %31 = arith.cmpi ne, %30, %c0_i32_21 : i32
    scf.if %31 {
      %c0_22 = arith.constant 0 : index
      %c0_23 = arith.constant 0 : index
      %32 = vector.load %arg7[%c0_22, %c0_23] : memref<4x1xf32, #tpu.memory_space<vmem>>, vector<4x1xf32>
      %33 = tpu.reciprocal %32 : vector<4x1xf32> -> vector<4x1xf32>
      %c0_24 = arith.constant 0 : index
      %c0_25 = arith.constant 0 : index
      %34 = vector.load %arg8[%c0_24, %c0_25] : memref<4x32xf32, #tpu.memory_space<vmem>>, vector<4x32xf32>
      %35 = vector.broadcast %33 : vector<4x1xf32> to vector<4x32xf32>
      %36 = arith.mulf %34, %35 : vector<4x32xf32>
      %c0_26 = arith.constant 0 : index
      %c0_27 = arith.constant 0 : index
      %c0_28 = arith.constant 0 : index
      %37 = vector.load %arg5[%c0_26, %c0_27, %c0_28] : memref<1x4x32xf32, #tpu.memory_space<vmem>>, vector<1x4x32xf32>
      %38 = vector.shape_cast %37 : vector<1x4x32xf32> to vector<4x32xf32>
      %39 = vector.shape_cast %36 : vector<4x32xf32> to vector<1x4x32xf32>
      tpu.vector_store %arg5[%c0_26, %c0_27, %c0_28], %39 {strides = array<i32>} : memref<1x4x32xf32, #tpu.memory_space<vmem>>, vector<1x4x32xf32>,
    } else {
    }
    return
  }
  func.func @transform_0(%arg0: i32, %arg1: i32, %arg2: i32) -> (i32, i32, i32) {
    %c0_i32 = arith.constant 0 : i32
    %c0_i32_0 = arith.constant 0 : i32
    return %arg0, %c0_i32, %arg2 : i32, i32, i32
  }
  func.func @transform_1(%arg0: i32, %arg1: i32, %arg2: i32) -> (i32, i32, i32) {
    %c0_i32 = arith.constant 0 : i32
    return %arg0, %arg1, %arg2 : i32, i32, i32
  }
  func.func @transform_2(%arg0: i32, %arg1: i32, %arg2: i32) -> (i32, i32, i32) {
    %c0_i32 = arith.constant 0 : i32
    %c0_i32_0 = arith.constant 0 : i32
    return %arg0, %c0_i32, %arg1 : i32, i32, i32
  }
}

</mosaic_0001>

<bundles_post_ra>
// kernel: tpu_custom_call.1
= control target key start
LH: loop header
LB: loop body
LE: loop exit
PB: predicated region body
PF: predicated region fallthrough
CT: control target
= control target key end

     0   :  { %7 = vsyncpa [#allocation6], 0  ;;  %s1046_s0 = inlined_call_operand.hbm [shape: f32[2,4,256], index: 0, kind: input, shape index: {}]   ;;  %s1047_s1 = inlined_call_operand.hbm [shape: f32[2,32,256], index: 1, kind: input, shape index: {}]   ;;  %s1048_s2 = inlined_call_operand.hbm [shape: f32[2,4,32], index: 2, kind: output, shape index: {}]  }
   0x1   :  { %9 = vsyncpa [#allocation6 + $0x1], 0 }
   0x2   :  { %10 = vsyncpa [#allocation9], 0 }
   0x3   :  { %12 = vsyncpa [#allocation9 + $0x1], 0 }
   0x4   :  { %13 = vsyncpa [#allocation7], 0 }
   0x5   :  { %15 = vsyncpa [#allocation7 + $0x1], 0  ;;  %s801_s9 = smov 0   ;;  %s803_s10 = smov 0  }
   0x6   :  { %s805_s11 = smov 0   ;;  %s807_s12 = smov 0  }
   0x7   :  { %s809_s13 = smov 0   ;;  %s811_s14 = smov 0  }
   0x8 LB: > { %s519_s15 = sadd.s32 4294967295, %s775_s14   ;;  %s520_s16 = sadd.s32 4294967294, %s775_s14   ;;  %s775_s14 = sphi %s811_s14, %s21_s14   ;;  %s771_s13 = sphi %s809_s13, %s1067_s13   ;;  %s767_s12 = sphi %s807_s12, %s1066_s12   ;;  %s763_s11 = sphi %s805_s11, %s1065_s11   ;;  %s759_s10 = sphi %s803_s10, %s1064_s10   ;;  %s755_s9 = sphi %s801_s9, %s1063_s9  }
   0x9   : > { %s40_s17 = sadd.s32 1, %s771_s13  ;;  %s49_s18 = sadd.s32 1, %s763_s11 }
   0xa   : > { %p42_p0 = scmp.ge.s32.totalorder %s40_s17, 2  ;;  %p56_p1 = scmp.ne.s32.totalorder %s763_s11, %s759_s10 }
   0xb   : > { %p57_p2 = scmp.eq.s32.totalorder %s775_s14, 0  ;;  %p62_p3 = scmp.ne.s32.totalorder %s759_s10, %s755_s9 }
   0xc   : > { %s1069_s17 = smov (%p42_p0, %s40_s17), 0  ;;  %p63_p5 = scmp.eq.s32.totalorder %s519_s15, 0 }
   0xd   : > { %p842_p4 = por %p57_p2, %p56_p1  ;;  %s44_s20 = ssub.s32 %s771_s13, %s1069_s17 }
   0xe   : > { %p118_p6 = scmp.eq.s32.totalorder %s519_s15, 1  ;;  %p47_p7 = scmp.eq.s32.totalorder %s44_s20, 0 }
   0xf   : > { %p848_p8 = por %p63_p5, %p62_p3  ;;  %p124_p10 = scmp.eq.s32.totalorder %s520_s16, 1 }
  0x10   : > { %p852_p9 = por %p118_p6, %p56_p1  ;;  %p564_p13 = scmp.lt.s32.totalorder %s775_s14, 2 }
  0x11   : > { %s1052_s21 = scalar_select %p848_p8, 1, 0 }
  0x12   : > { %s1053_s22 = scalar_select %p852_p9, 1, 0 }
  0x13   : > { %s857_s23 = scalar_select %p47_p7, %s763_s11, %s49_s18  }
  0x14   : > { %p859_p11 = por %p124_p10, %p62_p3  ;;  %s866_s25 = sand.u32 1, %s763_s11  }
  0x15   : > { %s523_s26 = sshll.u32 %s866_s25, 3  ;;  %s537_s27 = sshll.u32 %s771_s13, 7 }
  0x16   : > { %s1054_s24 = scalar_select %p859_p11, 1, 0 }
  0x17   : > { %s873_s30 = scalar_lea.hbm %s1046_s0, %s537_s27  ;;  %s148_s3 = scalar_lea.vmem [#allocation5], %s523_s26 }
  0x18   : > { %s158_s4 = sshll.u32 %s148_s3, 4  ;;  %p879_p0 = pnand %p564_p13, %p842_p4  ;;  %s875_s4 = int_to_ptr.vmem [resolvable:$true] %s158_s4 }
  0x19   : > { %s145_s6 = scalar_lea.sflag [#allocation6], %s866_s25  ;;  %s629_s7 = scalar_lea.hbm %s873_s30, 128 }
  0x1a   : > { %p630_p3 = scmp.ne.s32.totalorder %s873_s30, %s629_s7  ;;  %p631_p5 = pneg %p879_p0 }
  0x1b   : > { %s634_s16 = scalar_lea.hbm %s1046_s0, 256  ;;  %p635_p4 = scmp.lt.u32.totalorder %s873_s30, %s1046_s0 }
  0x1c   : > { %p632_p6 = pnand %p631_p5, %p630_p3  ;;  %p636_p10 = scmp.lt.u32.totalorder %s634_s16, %s629_s7 }
  0x1d   : > { %p638_p12 = scmp.lt.u32.totalorder %s629_s7, %s873_s30 }
  0x1e   : > { %p633_p7 = pneg %p632_p6  ;;  %p637_p13 = por %p636_p10, %p635_p4 }
  0x20   : > { %p639_p1 = por %p638_p12, %p637_p13 }
  0x22   : > { %p640_p2 = pnand %p639_p1, %p633_p7 }
  0x24   : > { %643 = shalt.err (!%p640_p2)
}
  0x25   : > { %s644_s20 = scalar_lea.vmem %s875_s4, 128  ;;  %s777_s26 = smov [#allocation5]  }
  0x26   : > { %p645_p3 = scmp.ne.s32.totalorder %s875_s4, %s644_s20  ;;  %s649_s27 = sshll.u32 %s777_s26, 4  ;;  %s650_s27 = int_to_ptr.vmem [resolvable:$false] %s649_s27 }
  0x27   : > { %s651_s28 = scalar_lea.vmem %s650_s27, 256  ;;  %p652_p9 = scmp.lt.s32.totalorder %s875_s4, %s650_s27 }
  0x28   : > { %p647_p6 = pnand %p645_p3, %p631_p5  ;;  %p653_p4 = scmp.lt.s32.totalorder %s651_s28, %s644_s20 }
  0x2a   : > { %p648_p11 = pneg %p647_p6  ;;  %p654_p10 = por %p653_p4, %p652_p9 }
  0x2c   : > { %p655_p12 = pnand %p654_p10, %p648_p11 }
  0x2e   : > { %658 = shalt.err (!%p655_p12)
}
  0x2f   : > { %556 = dma.hbm_to_vmem [thread:$0]  (!%p879_p0), %s873_s30, 128, %s875_s4, %s145_s6  }
  0x30   : > { %p1056_p1 = scmp.lt.s32.totalorder %s775_s14, 3  ;;  %p1057_p2 = scmp.ge.s32.totalorder %s775_s14, 1 }
  0x31   : > { %s526_s3 = sshll.u32 %s866_s25, 6  ;;  %s538_s7 = sshll.u32 %s771_s13, 10 }
  0x32   : > { %p915_p7 = pnand %p1057_p2, %p1056_p1  ;;  %s924_s16 = scalar_lea.hbm %s1047_s1, %s538_s7 }
  0x33   : > { %s169_s18 = scalar_lea.vmem [#allocation8], %s526_s3  ;;  %s166_s30 = scalar_lea.sflag [#allocation9], %s866_s25 }
  0x34   : > { %s181_s19 = sshll.u32 %s169_s18, 4  ;;  %s659_s4 = scalar_lea.hbm %s924_s16, 1024  ;;  %s926_s19 = int_to_ptr.vmem [resolvable:$true] %s181_s19 }
  0x35   : > { %p660_p9 = scmp.ne.s32.totalorder %s924_s16, %s659_s4  ;;  %s664_s26 = scalar_lea.hbm %s1047_s1, 2048 }
  0x36   : > { %p665_p3 = scmp.lt.u32.totalorder %s924_s16, %s1047_s1  ;;  %p666_p6 = scmp.lt.u32.totalorder %s664_s26, %s659_s4 }
  0x37   : > { %p662_p11 = pnand %p660_p9, %p631_p5  ;;  %p668_p10 = scmp.lt.u32.totalorder %s659_s4, %s924_s16 }
  0x38   : > { %p667_p4 = por %p666_p6, %p665_p3 }
  0x39   : > { %p663_p13 = pneg %p662_p11 }
  0x3a   : > { %p669_p12 = por %p668_p10, %p667_p4 }
  0x3c   : > { %p670_p1 = pnand %p669_p12, %p663_p13 }
  0x3e   : > { %673 = shalt.err (!%p670_p1)
}
  0x3f   : > { %s674_s3 = scalar_lea.vmem %s926_s19, 1024  ;;  %s778_s7 = smov [#allocation8]  }
  0x40   : > { %p675_p2 = scmp.ne.s32.totalorder %s926_s19, %s674_s3  ;;  %s679_s8 = sshll.u32 %s778_s7, 4  ;;  %s680_s8 = int_to_ptr.vmem [resolvable:$false] %s679_s8 }
  0x41   : > { %s681_s15 = scalar_lea.vmem %s680_s8, 2048  ;;  %p682_p8 = scmp.lt.s32.totalorder %s926_s19, %s680_s8 }
  0x42   : > { %p677_p9 = pnand %p675_p2, %p631_p5  ;;  %p683_p3 = scmp.lt.s32.totalorder %s681_s15, %s674_s3 }
  0x44   : > { %p678_p11 = pneg %p677_p9  ;;  %p684_p6 = por %p683_p3, %p682_p8 }
  0x46   : > { %p685_p4 = pnand %p684_p6, %p678_p11 }
  0x48   : > { %688 = shalt.err (!%p685_p4)
}
  0x49   : > { %s779_s18 = smov 256   ;;  %s780_s4 = smov 16  }
  0x4a   : > { %559 = dma.hbm_to_vmem [thread:$0]  (!%p879_p0), %s924_s16, 1024, %s926_s19, %s166_s30, %s779_s18, %s779_s18, %s780_s4  }
  0x4b   : > { %193 = sbr.rel (%p915_p7) target bundleno = 693 (0x2b5), region = 28  ;;  %s957_s6 = sand.u32 (!%p915_p7), 1, %s759_s10  }
  0x4c   : > { %s530_s20 = sshll.u32 (!%p915_p7), %s957_s6, 3  ;;  %s196_s26 = scalar_lea.sflag (!%p915_p7), [#allocation6], %s957_s6 }
  0x4d   : > { %s199_s27 = scalar_lea.vmem (!%p915_p7), [#allocation5], %s530_s20  ;;  %p1059_p8 = scmp.ne.s32.totalorder (!%p915_p7), %s1052_s21, 0 }
  0x52   : > { %742 = dma.done.wait (%p1059_p8), %s196_s26, 128  }
  0x53   : > { %744 = vsyncadd (%p1059_p8), %s196_s26, 4294967168  ;;  %s531_s25 = sshll.u32 %s957_s6, 6  ;;  %s205_s5 = scalar_lea.sflag [#allocation9], %s957_s6 }
  0x54   : > { %s967_s29 = scalar_lea.vmem [#allocation8], %s531_s25 }
  0x55   : > { %746 = dma.done.wait (%p1059_p8), %s205_s5, 1024  }
  0x56   : > { %748 = vsyncadd (%p1059_p8), %s205_s5, 4294966272  ;;  %vm241_vm0 = vcmask 3072   ;;  %v781_v0 = vmov -inf   ;;  %vm259_vm1 = vcmask 1043456   ;;  %v246_v1 = vld [vmem:[%s199_s27] sm:$0xff]  ;;  %v782_v6 = vmov 0  }
  0x57   : > { %242 = vst.msk [vmem:[#allocation2] sm:$0xf] %vm241_vm0, %v781_v0  ;;  %v257_v2 = vcombine.high %v246_v1, %v246_v1  ;;  %v260_v3 = vsel %vm259_vm1, %v246_v1, -inf  ;;  %620 = vset.pattern.permute.xlu0 %v782_v6  ;;  %621 = vset.pattern.permute.xlu1 %v782_v6  ;;  %v783_v7 = vmov 0.0   ;;  %v248_v12 = vld [vmem:[%s967_s29 + $0x8] sm:$0xff]  ;;  %v250_v13 = vld [vmem:[%s967_s29 + $0x18] sm:$0xff]  ;;  %v276_v26 = vlaneseq }
  0x58   : > { %243 = vst.msk [vmem:[#allocation3] sm:$0xf] %vm241_vm0, %v783_v7  ;;  %v539_v14 = vpack.c.bf16 %v250_v13, %v248_v12  ;;  %v247_v15 = vld [vmem:[%s967_s29] sm:$0xff]  ;;  %v249_v16 = vld [vmem:[%s967_s29 + $0x10] sm:$0xff]  ;;  %v252_v18 = vld [vmem:[%s967_s29 + $0x28] sm:$0xff]  ;;  %vm244_vm2 = vcmask 257024  }
  0x59   : > { %v261_v4 = vsel %vm259_vm1, %v257_v2, -inf  ;;  %v541_v17 = vpack.c.bf16 %v249_v16, %v247_v15  ;;  %v254_v19 = vld [vmem:[%s967_s29 + $0x38] sm:$0xff]  ;;  %v251_v20 = vld [vmem:[%s967_s29 + $0x20] sm:$0xff]  ;;  %v253_v22 = vld [vmem:[%s967_s29 + $0x30] sm:$0xff]  ;;  %v784_v24 = vmov 839922192  }
  0x5a   : > { %v262_v5 = vmax.f32 %v260_v3, %v261_v4  ;;  %540 = vmatprep.subr.bf16.mxu0 %v539_v14  ;;  %v543_v21 = vpack.c.bf16 %v254_v19, %v252_v18  ;;  %v545_v23 = vpack.c.bf16 %v253_v22, %v251_v20  ;;  %v274_v25 = vunpack.c.l.s4 %v784_v24  ;;  %245 = vst.msk [vmem:[#allocation4] sm:$0xf] %vm244_vm2, %v783_v7  ;;  %s532_s21 = sshll.u32 %s957_s6, 2  ;;  %s534_s16 = sshll.u32 %s767_s12, 6 }
  0x5b   : > { %542 = vmatpush1.bf16.xpose.msra.mxu0 %v541_v17  ;;  %v277_v28 = vshrl.u32 %v276_v26, 7  ;;  %s233_s19 = scalar_lea.vmem [#allocation10], %s532_s21  ;;  %s996_s7 = scalar_lea.hbm %s1048_s2, %s534_s16 }
  0x5c   : > { %263 = vmax.xlane.f32.xlu0 %v262_v5  ;;  %544 = vmatprep.subr.bf16.mxu0 %v543_v21  ;;  %v275_v27 = vunpack.c.0.s8 %v274_v25  ;;  %s406_s30 = sshll.u32 %s233_s19, 4  ;;  %s392_s8 = scalar_lea.sflag [#allocation7], %s957_s6  ;;  %s998_s30 = int_to_ptr.vmem [resolvable:$true] %s406_s30 }
  0x5d   : > { %s689_s15 = scalar_lea.vmem %s998_s30, 64  ;;  %p1060_p5 = scmp.ne.s32.totalorder %s1053_s22, 0 }
  0x5e   : > { %v255_v8 = vld [vmem:[#allocation2] sm:$0xf]  ;;  %v278_v29 = vsub.s32 %v275_v27, %v277_v28  ;;  %p690_p0 = scmp.ne.s32.totalorder %s998_s30, %s689_s15  ;;  %s785_s12 = smov [#allocation10]  }
  0x5f   : > { %v284_v41 = vld [vmem:[#allocation3] sm:$0xf]  ;;  %s693_s18 = sshll.u32 %s785_s12, 4  ;;  %s694_s18 = int_to_ptr.vmem [resolvable:$false] %s693_s18 }
  0x60   : > { %p691_p7 = pnand %p690_p0, %p1060_p5  ;;  %s695_s4 = scalar_lea.vmem %s694_s18, 128 }
  0x61   : > { %v297_v47 = vld [vmem:[#allocation4] sm:$0xf]  ;;  %p696_p10 = scmp.lt.s32.totalorder %s998_s30, %s694_s18  ;;  %p697_p12 = scmp.lt.s32.totalorder %s695_s4, %s689_s15 }
  0x62   : > { %p692_p13 = pneg %p691_p7 }
  0x63   : > { %546 = vmatpush1.bf16.xpose.msra.mxu0 %v545_v23  ;;  %p698_p1 = por %p697_p12, %p696_p10 }
  0x65   : > { %p699_p2 = pnand %p698_p1, %p692_p13 }
  0xe9   : > { %v264_v9 = vpop.xlane.xlu0 %263 }
  0xea   : > { %v265_v10 = vmax.f32 %v255_v8, %v264_v9 }
  0xec   : > { %v266_v11 = vsub.f32 %v255_v8, %v265_v10  ;;  %377 = vst.msk [vmem:[#allocation2] sm:$0xf] %vm241_vm0, %v265_v10  ;;  %271 = vperm.xlu0 %620, %v265_v10  }
  0xee   : > { %v267_v39 = vmul.f32 1.442695, %v266_v11 }
 0x16b   : > { %v272_v30 = vpop.permute.xlu0 %271 }
 0x16c   : > { %v279_v31 = vrot.slane %v272_v30, %v278_v29 }
 0x16e   : > { %v281_v32 = vsub.f32 %v246_v1, %v279_v31 }
 0x170   : > { %v282_v33 = vmul.f32 1.442695, %v281_v32 }
 0x172   : > { %623 = vpow2.f32 %v282_v33 }
 0x173   : > { %625 = vpow2.f32 %v267_v39 }
 0x17c   : > { %v624_v34 = vpop.eup %623 }
 0x17d   : > { %v287_v35 = vcombine.high %v624_v34, %v624_v34  ;;  %v289_v36 = vsel %vm259_vm1, %v624_v34, 0.0  ;;  %v626_v40 = vpop.eup %625 }
 0x17e   : > { %v285_v42 = vmul.f32 %v626_v40, %v284_v41 }
 0x17f   : > { %368 = vmatprep.mubr.f32.mxu0 %v287_v35  ;;  %v290_v37 = vsel %vm259_vm1, %v287_v35, 0.0 }
 0x180   : > { %369 = vmatmul.mubr.f32.vlgmr.msra.gmra.mrb[0].mxu0 %v624_v34  ;;  %v291_v38 = vadd.f32 %v290_v37, %v289_v36 }
 0x182   : > { %292 = vadd.xlane.f32.xlu1 %v291_v38 }
 0x193   : > { %300 = vperm.xlu1 %621, %v626_v40  }
 0x20f   : > { %v293_v43 = vpop.xlane.xlu1 %292 }
 0x210   : > { %v294_v44 = vadd.f32 %v293_v43, %v285_v42 }
 0x212   : > { %296 = vst.msk [vmem:[#allocation3] sm:$0xf] %vm241_vm0, %v294_v44 }
 0x213   : > { %v301_v48 = vpop.permute.xlu1 %300 }
 0x214   : > { %v303_v49 = vmul.f32 %v301_v48, %v297_v47 }
 0x219   : > { %v381_v45 = vld [vmem:[#allocation3] sm:$0xf] }
 0x21a   : > { %627 = vrcp.f32 %v381_v45 }
 0x224   : > { %v628_v46 = vpop.eup %627 }
 0x225   : > { %386 = vperm.xlu1 %621, %v628_v46  }
 0x253   : > { %v370_v50 = vpop.f32.mrb[0].mxu0 }
 0x254   : > { %v374_v51 = vadd.f32 %v370_v50, %v303_v49  ;;  %v372_v52 = vpop.f32.mrb[1].mxu0 }
 0x256   : > { %376 = vst.msk [vmem:[#allocation4] sm:$0xf] %vm244_vm2, %v374_v51 }
 0x25d   : > { %v383_v53 = vld [vmem:[#allocation4] sm:$0xf] }
 0x2a4   : > { %v387_v54 = vpop.permute.xlu1 %386 }
 0x2a5   : > { %v389_v55 = vmul.f32 %v387_v54, %v383_v53 }
 0x2a7   : > { %390 = vst.msk [vmem:[%s233_s19] sm:$0xf] %vm244_vm2, %v389_v55 }
 0x2a8   : > { %702 = shalt.err (!%p699_p2)
}
 0x2a9   : > { %s703_s6 = scalar_lea.hbm %s996_s7, 64  ;;  %s707_s27 = scalar_lea.hbm %s1048_s2, 128 }
 0x2aa   : > { %p704_p9 = scmp.ne.s32.totalorder %s996_s7, %s703_s6  ;;  %p708_p6 = scmp.lt.u32.totalorder %s996_s7, %s1048_s2 }
 0x2ab   : > { %p709_p4 = scmp.lt.u32.totalorder %s707_s27, %s703_s6  ;;  %p711_p0 = scmp.lt.u32.totalorder %s703_s6, %s996_s7 }
 0x2ac   : > { %p705_p11 = pnand %p704_p9, %p1060_p5 }
 0x2ad   : > { %p710_p8 = por %p709_p4, %p708_p6 }
 0x2ae   : > { %p706_p3 = pneg %p705_p11 }
 0x2af   : > { %p712_p7 = por %p711_p0, %p710_p8 }
 0x2b1   : > { %p713_p13 = pnand %p712_p7, %p706_p3 }
 0x2b3   : > { %716 = shalt.err (!%p713_p13)
}
 0x2b4   : > { %551 = dma.vmem_to_hbm [thread:$0]  (%p1060_p5), %s998_s30, 64, %s996_s7, %s392_s8  }
 0x2b5 PF: > { %s418_s29 = sand.u32 1, %s755_s9   ;;  %p1061_p10 = scmp.ne.s32.totalorder %s1054_s24, 0 }
 0x2b6   : > { %p1062_p12 = scmp.ge.s32.totalorder %s775_s14, 2  ;;  %s419_s21 = scalar_lea.sflag [#allocation7], %s418_s29 }
 0x2b8   : > { %p561_p1 = pnand %p1062_p12, %p1061_p10 }
 0x2ba   : > { %750 = dma.done.wait (!%p561_p1), %s419_s21, 64  }
 0x2bb   : > { %752 = vsyncadd (!%p561_p1), %s419_s21, 4294967232  ;;  %s21_s14 = sadd.s32 1, %s775_s14   ;;  %s1063_s9 = smov %s759_s10 }
 0x2bc   : > { %p18_p2 = scmp.ge.s32.totalorder %s21_s14, 4   ;;  %s1064_s10 = smov %s763_s11 }
 0x2bd   : > { %s1065_s11 = smov %s857_s23  ;;  %s1066_s12 = smov %s771_s13 }
 0x2be   : > { %s1067_s13 = smov %s1069_s17  ;;  %20 = sbr.rel (!%p18_p2) target bundleno = 8 (0x8), region = 94 }
 0x2c5   :  { %424 = vsyncpa [#allocation6], 1 }
 0x2c6   :  { %426 = vsyncpa [#allocation6 + $0x1], 1 }
 0x2c7   :  { %427 = vsyncpa [#allocation9], 1 }
 0x2c8   :  { %429 = vsyncpa [#allocation9 + $0x1], 1 }
 0x2c9   :  { %430 = vsyncpa [#allocation7], 1 }
 0x2ca   :  { %432 = vsyncpa [#allocation7 + $0x1], 1 }

</bundles_post_ra>
